<compile_context>
chip_gen: v5e
topology: v5e:2x2
jax: 0.10.0
libtpu: 0.0.40
codegen_flags: <defaults>
</compile_context>

<pallas_src>
import functools

import jax
import jax.numpy as jnp
from jax.experimental import pallas as pl
from jax.experimental.pallas import tpu as pltpu

# Configuration mirroring:
#   DimwisePolynomialRegressor(x_dim=4, y_dim=4, x_deg=3, y_deg=2,
#                              num_steps=3, x_dimwise=False, y_dimwise=False)
X_DIM, Y_DIM = 4, 4
X_DEG, Y_DEG = 3, 2
NUM_STEPS = 3
FEAT_DIM = X_DEG * X_DIM + Y_DEG * Y_DIM      # polynomial basis width = 20
COMB_DIM = X_DIM + Y_DIM                      # merged x|y slab rows     = 8
MAX_DEG = max(X_DEG, Y_DEG)                   # fused per-power dots     = 3


def _round_up(v, m):
    return -(-v // m) * m


def _poly_kernel(k_ref,          # scalar prefetch: step index (drives index_maps)
                 xy_ref,         # [COMB_DIM, TB]   merged x|y slab, batch on lanes
                 stats_ref,      # [COMB_DIM, COMB_DIM]  cols: mean | 1/std | intercept | 0...
                 w_ref,          # [MAX_DEG, X_DIM, COMB_DIM]  per-power [x|y] weights
                 out_ref):       # [X_DIM, TB]
    del k_ref  # step selection already done by the BlockSpec index_maps

    stats = stats_ref[...]                    # [8, 8]
    mean = stats[:, 0:1]                      # [8, 1]
    inv_std = stats[:, 1:2]                   # [8, 1]
    icept = stats[:X_DIM, 2:3]                # [4, 1]

    # Standardize the whole 8-row slab in one vreg-dense op.
    pre = (xy_ref[...] - mean) * inv_std      # [8, TB]

    # Per-power accumulation: MAX_DEG dots of [4,8] @ [8,TB].
    acc = jnp.dot(w_ref[0], pre, preferred_element_type=jnp.float32) + icept
    p = pre
    for d in range(1, MAX_DEG):
        p = p * pre                           # Horner-style power reuse
        acc = acc + jnp.dot(w_ref[d], p, preferred_element_type=jnp.float32)

    out_ref[...] = acc.astype(out_ref.dtype)


@functools.partial(jax.jit, static_argnames=("block_b",))
def dimwise_poly_forward(x, y, t, params, *, block_b=2048):
    """Pallas forward.  x: [B, X_DIM] f32, y: [B, Y_DIM] f32, t: [B, 1] int.

    Precondition: all entries of t are equal (the module asserts this).
    """
    x_means, x_stds, y_means, y_stds, weights, intercepts = params
    B = x.shape[0]

    # Batch tile: as large as requested, but keep >= 2 grid blocks when the
    # batch allows so the single "parallel" axis shards across both v7x TCs.
    tb_cap = _round_up(max(block_b, 128), 128)
    half = _round_up(-(-B // 2), 128)
    TB = max(128, min(tb_cap, half))
    B_pad = _round_up(B, TB)
    n_blocks = B_pad // TB

    k = t[0, 0].astype(jnp.int32).reshape((1,))

    # ---- Packed per-step stats block [S, 8, 8]: mean | 1/std | intercept ----
    mean8 = jnp.concatenate([x_means, y_means], axis=1)            # [S, 8]
    inv8 = jnp.concatenate([1.0 / x_stds, 1.0 / y_stds], axis=1)   # [S, 8]
    ic8 = jnp.pad(intercepts, ((0, 0), (0, COMB_DIM - X_DIM)))     # [S, 8]
    stats = jnp.stack([mean8, inv8, ic8], axis=-1)                 # [S, 8, 3]
    stats = jnp.pad(stats, ((0, 0), (0, 0), (0, COMB_DIM - 3)))    # [S, 8, 8]
    stats = stats.astype(jnp.float32)

    # ---- Packed per-step weight block [S, MAX_DEG, X_DIM, COMB_DIM] ---------
    # weights: [S, FEAT_DIM, X_DIM], feature order x, x^2, x^3, y, y^2.
    w_t = jnp.transpose(weights, (0, 2, 1)).astype(jnp.float32)    # [S, out, feat]
    wx = w_t[:, :, : X_DEG * X_DIM].reshape(NUM_STEPS, X_DIM, X_DEG, X_DIM)
    wx = jnp.transpose(wx, (0, 2, 1, 3))                           # [S, 3, out, in_x]
    wy = w_t[:, :, X_DEG * X_DIM:].reshape(NUM_STEPS, X_DIM, Y_DEG, Y_DIM)
    wy = jnp.transpose(wy, (0, 2, 1, 3))                           # [S, 2, out, in_y]
    wy = jnp.pad(wy, ((0, 0), (0, MAX_DEG - Y_DEG), (0, 0), (0, 0)))
    w_packed = jnp.concatenate([wx, wy], axis=-1)                  # [S, 3, 4, 8]

    # ---- Lane-dense merged activation slab [8, B_pad] -----------------------
    xy_t = jnp.concatenate([x.T, y.T], axis=0).astype(jnp.float32)  # [8, B]
    slab = jnp.pad(xy_t, ((0, 0), (0, B_pad - B)))                  # [8, B_pad]

    grid_spec = pltpu.PrefetchScalarGridSpec(
        num_scalar_prefetch=1,
        grid=(n_blocks,),
        in_specs=[
            pl.BlockSpec((COMB_DIM, TB), lambda i, k: (0, i)),                      # slab
            pl.BlockSpec((pl.Squeezed(), COMB_DIM, COMB_DIM),
                         lambda i, k: (k[0], 0, 0)),                                # stats[k]
            pl.BlockSpec((pl.Squeezed(), MAX_DEG, X_DIM, COMB_DIM),
                         lambda i, k: (k[0], 0, 0, 0)),                             # weights[k]
        ],
        out_specs=pl.BlockSpec((X_DIM, TB), lambda i, k: (0, i)),
    )

    # Bytes: input slab + sublane-padded (4->8) output writeback + per-step
    # lane-padded parameter tiles.  Flops: 3 dots of [4,8]@[8,TB] + pointwise.
    bytes_accessed = (4 * B_pad * COMB_DIM
                      + 4 * B_pad * 8
                      + n_blocks * 4 * 128 * (COMB_DIM + MAX_DEG * COMB_DIM))
    flops = (2 * MAX_DEG * X_DIM * COMB_DIM + 6 * COMB_DIM) * B_pad

    out_t = pl.pallas_call(
        _poly_kernel,
        grid_spec=grid_spec,
        out_shape=jax.ShapeDtypeStruct((X_DIM, B_pad), jnp.float32),
        compiler_params=pltpu.CompilerParams(
            dimension_semantics=("parallel",)),        # shards grid over both TCs on v7x
        cost_estimate=pl.CostEstimate(
            flops=flops, transcendentals=0, bytes_accessed=bytes_accessed),
    )(k, slab, stats, w_packed)

    # Drop the batch padding and return the module's [B, X_DIM] layout.
    return out_t[:, :B].T


def reference_forward(x, y, t, params):
    """Pure-JAX reference matching the PyTorch forward."""
    x_means, x_stds, y_means, y_stds, weights, intercepts = params
    k = int(t[0, 0])
    x_pre = (x - x_means[k]) / x_stds[k]
    y_pre = (y - y_means[k]) / y_stds[k]
    feats = [x_pre] + [x_pre ** d for d in range(2, X_DEG + 1)]
    feats += [y_pre] + [y_pre ** d for d in range(2, Y_DEG + 1)]
    X = jnp.concatenate(feats, axis=-1)
    return (X @ weights[k] + intercepts[k]).astype(jnp.float32)


def make_params(key):
    """Deterministic synthetic stats + ridge weights (shapes from __init__/fit)."""
    k1, k2, k3, k4, k5, k6 = jax.random.split(key, 6)
    x_means = jax.random.normal(k1, (NUM_STEPS, X_DIM), jnp.float32)
    x_stds = 0.5 + jax.random.uniform(k2, (NUM_STEPS, X_DIM), jnp.float32)   # strictly > 0
    y_means = jax.random.normal(k3, (NUM_STEPS, Y_DIM), jnp.float32)
    y_stds = 0.5 + jax.random.uniform(k4, (NUM_STEPS, Y_DIM), jnp.float32)
    # One ridge model per (step, output dim): coef [FEAT_DIM], intercept scalar.
    weights = 0.1 * jax.random.normal(k5, (NUM_STEPS, FEAT_DIM, X_DIM), jnp.float32)
    intercepts = 0.1 * jax.random.normal(k6, (NUM_STEPS, X_DIM), jnp.float32)
    return (x_means, x_stds, y_means, y_stds, weights, intercepts)


if __name__ == "__main__":
    B = 200            # small batch; TB capped to 128 so the grid is (2,)
    key = jax.random.PRNGKey(0)
    kp, kx, ky = jax.random.split(key, 3)
    params = make_params(kp)

    x = jax.random.normal(kx, (B, X_DIM), jnp.float32)
    y = jax.random.normal(ky, (B, Y_DIM), jnp.float32)
    t = jnp.full((B, 1), 1, dtype=jnp.int32)      # all rows share step k=1

    # Mirrors the module's `assert torch.all(t == k)` (wrapper precondition).
    assert bool(jnp.all(t == t[0, 0]))

    out = dimwise_poly_forward(x, y, t, params)
    out = jax.block_until_ready(out)

    ref = reference_forward(x, y, t, params)
    assert out.shape == (B, X_DIM) and out.dtype == jnp.float32
    assert bool(jnp.allclose(out, ref, rtol=1e-4, atol=1e-4))

    print("KERNEL_OK")
</pallas_src>

<mosaic_0001>
module attributes {stable_mosaic.version = 11 : i64} {
  func.func @_poly_kernel(%arg0: i32, %arg1: memref<1xi32, #tpu.memory_space<smem>>, %arg2: memref<8x128xf32, #tpu.memory_space<vmem>>, %arg3: memref<1x8x8xf32, #tpu.memory_space<vmem>>, %arg4: memref<1x3x4x8xf32, #tpu.memory_space<vmem>>, %arg5: memref<4x128xf32, #tpu.memory_space<vmem>>) attributes {dimension_semantics = [#tpu.dimension_semantics<parallel>], iteration_bounds = array<i64: 2>, scalar_prefetch = 1 : i64, scratch_operands = 0 : i64, tpu.core_type = #tpu.core_type<tc>, window_params = [{transform_indices = @transform_0, window_bounds = array<i64: 8, 128>}, {transform_indices = @transform_1, window_bounds = array<i64: 1, 8, 8>}, {transform_indices = @transform_2, window_bounds = array<i64: 1, 3, 4, 8>}, {transform_indices = @transform_3, window_bounds = array<i64: 4, 128>}]} {
    %c0 = arith.constant 0 : index
    %c0_0 = arith.constant 0 : index
    %c0_1 = arith.constant 0 : index
    %0 = vector.load %arg3[%c0, %c0_0, %c0_1] : memref<1x8x8xf32, #tpu.memory_space<vmem>>, vector<1x8x8xf32>
    %1 = vector.shape_cast %0 : vector<1x8x8xf32> to vector<8x8xf32>
    %2 = vector.extract_strided_slice %1 {offsets = [0, 0], sizes = [8, 1], strides = [1, 1]} : vector<8x8xf32> to vector<8x1xf32>
    %3 = vector.extract_strided_slice %1 {offsets = [0, 1], sizes = [8, 1], strides = [1, 1]} : vector<8x8xf32> to vector<8x1xf32>
    %4 = vector.extract_strided_slice %1 {offsets = [0, 2], sizes = [4, 1], strides = [1, 1]} : vector<8x8xf32> to vector<4x1xf32>
    %c0_2 = arith.constant 0 : index
    %c0_3 = arith.constant 0 : index
    %5 = vector.load %arg2[%c0_2, %c0_3] : memref<8x128xf32, #tpu.memory_space<vmem>>, vector<8x128xf32>
    %6 = vector.broadcast %2 : vector<8x1xf32> to vector<8x128xf32>
    %7 = arith.subf %5, %6 : vector<8x128xf32>
    %8 = vector.broadcast %3 : vector<8x1xf32> to vector<8x128xf32>
    %9 = arith.mulf %7, %8 : vector<8x128xf32>
    %c0_4 = arith.constant 0 : index
    %c0_5 = arith.constant 0 : index
    %c0_6 = arith.constant 0 : index
    %c0_7 = arith.constant 0 : index
    %10 = vector.load %arg4[%c0_4, %c0_5, %c0_6, %c0_7] : memref<1x3x4x8xf32, #tpu.memory_space<vmem>>, vector<1x1x4x8xf32>
    %11 = vector.shape_cast %10 : vector<1x1x4x8xf32> to vector<4x8xf32>
    %cst = arith.constant dense<0.000000e+00> : vector<4x128xf32>
    %12 = tpu.matmul %11, %9, %cst {dimension_numbers = #tpu.dot_dimension_numbers<[1], [0], [0], [1], [0, 0, 1, 1], [], []>} : vector<4x8xf32>, vector<8x128xf32>, vector<4x128xf32> -> vector<4x128xf32>
    %13 = vector.broadcast %4 : vector<4x1xf32> to vector<4x128xf32>
    %14 = arith.addf %12, %13 : vector<4x128xf32>
    %15 = arith.mulf %9, %9 : vector<8x128xf32>
    %c0_8 = arith.constant 0 : index
    %c1 = arith.constant 1 : index
    %c0_9 = arith.constant 0 : index
    %c0_10 = arith.constant 0 : index
    %16 = vector.load %arg4[%c0_8, %c1, %c0_9, %c0_10] : memref<1x3x4x8xf32, #tpu.memory_space<vmem>>, vector<1x1x4x8xf32>
    %17 = vector.shape_cast %16 : vector<1x1x4x8xf32> to vector<4x8xf32>
    %cst_11 = arith.constant dense<0.000000e+00> : vector<4x128xf32>
    %18 = tpu.matmul %17, %15, %cst_11 {dimension_numbers = #tpu.dot_dimension_numbers<[1], [0], [0], [1], [0, 0, 1, 1], [], []>} : vector<4x8xf32>, vector<8x128xf32>, vector<4x128xf32> -> vector<4x128xf32>
    %19 = arith.addf %14, %18 : vector<4x128xf32>
    %20 = arith.mulf %15, %9 : vector<8x128xf32>
    %c0_12 = arith.constant 0 : index
    %c2 = arith.constant 2 : index
    %c0_13 = arith.constant 0 : index
    %c0_14 = arith.constant 0 : index
    %21 = vector.load %arg4[%c0_12, %c2, %c0_13, %c0_14] : memref<1x3x4x8xf32, #tpu.memory_space<vmem>>, vector<1x1x4x8xf32>
    %22 = vector.shape_cast %21 : vector<1x1x4x8xf32> to vector<4x8xf32>
    %cst_15 = arith.constant dense<0.000000e+00> : vector<4x128xf32>
    %23 = tpu.matmul %22, %20, %cst_15 {dimension_numbers = #tpu.dot_dimension_numbers<[1], [0], [0], [1], [0, 0, 1, 1], [], []>} : vector<4x8xf32>, vector<8x128xf32>, vector<4x128xf32> -> vector<4x128xf32>
    %24 = arith.addf %19, %23 : vector<4x128xf32>
    %c0_16 = arith.constant 0 : index
    %c0_17 = arith.constant 0 : index
    %25 = vector.load %arg5[%c0_16, %c0_17] : memref<4x128xf32, #tpu.memory_space<vmem>>, vector<4x128xf32>
    tpu.vector_store %arg5[%c0_16, %c0_17], %24 {strides = array<i32>} : memref<4x128xf32, #tpu.memory_space<vmem>>, vector<4x128xf32>,
    return
  }
  func.func @transform_0(%arg0: i32, %arg1: memref<1xi32, #tpu.memory_space<smem>>) -> (i32, i32) {
    %c0_i32 = arith.constant 0 : i32
    %c0_i32_0 = arith.constant 0 : i32
    return %c0_i32, %arg0 : i32, i32
  }
  func.func @transform_1(%arg0: i32, %arg1: memref<1xi32, #tpu.memory_space<smem>>) -> (i32, i32, i32) {
    %c0 = arith.constant 0 : index
    %0 = memref.load %arg1[%c0] : memref<1xi32, #tpu.memory_space<smem>>
    %c0_i32 = arith.constant 0 : i32
    %c0_i32_0 = arith.constant 0 : i32
    %c0_i32_1 = arith.constant 0 : i32
    return %0, %c0_i32, %c0_i32_0 : i32, i32, i32
  }
  func.func @transform_2(%arg0: i32, %arg1: memref<1xi32, #tpu.memory_space<smem>>) -> (i32, i32, i32, i32) {
    %c0 = arith.constant 0 : index
    %0 = memref.load %arg1[%c0] : memref<1xi32, #tpu.memory_space<smem>>
    %c0_i32 = arith.constant 0 : i32
    %c0_i32_0 = arith.constant 0 : i32
    %c0_i32_1 = arith.constant 0 : i32
    %c0_i32_2 = arith.constant 0 : i32
    return %0, %c0_i32, %c0_i32_0, %c0_i32_1 : i32, i32, i32, i32
  }
  func.func @transform_3(%arg0: i32, %arg1: memref<1xi32, #tpu.memory_space<smem>>) -> (i32, i32) {
    %c0_i32 = arith.constant 0 : i32
    %c0_i32_0 = arith.constant 0 : i32
    return %c0_i32, %arg0 : i32, i32
  }
}

</mosaic_0001>

<bundles_post_ra>
// kernel: dimwise_poly_forward.1
= control target key start
LH: loop header
LB: loop body
LE: loop exit
PB: predicated region body
PF: predicated region fallthrough
CT: control target
= control target key end

     0   :  { %s470_s17 = smov 0   ;;  %s497_s0 = inlined_call_operand.<no memory space> [shape: s32[1], index: 0, kind: input, shape index: {}]   ;;  %s498_s1 = inlined_call_operand.vmem [shape: f32[8,256], index: 1, kind: input, shape index: {}]   ;;  %s499_s2 = inlined_call_operand.vmem [shape: f32[3,8,8], index: 2, kind: input, shape index: {}]   ;;  %s500_s3 = inlined_call_operand.vmem [shape: f32[3,3,4,8], index: 3, kind: input, shape index: {}]   ;;  %s501_s4 = inlined_call_operand.vmem [shape: f32[4,256], index: 4, kind: output, shape index: {}]  }
   0x1   :  { %9 = sst [smem:[#allocation3]] %s497_s0 }
   0x2 LB: > { %s399_s18 = sadd.s32 4294967295, %s437_s17   ;;  %p403_p0 = scmp.ge.s32.totalorder %s437_s17, 1  ;;  %s437_s17 = sphi %s470_s17, %s15_s17  }
   0x3   : > { %p165_p1 = scmp.lt.s32.totalorder %s437_s17, 3 }
   0x5   : > { %p166_p2 = pnand %p403_p0, %p165_p1 }
   0x6   : > { %s202_s19 = sld [smem:[#allocation3]] (!%p166_p2)  ;;  %p198_p4 = scmp.lt.s32.totalorder (!%p166_p2), %s399_s18, 1 }
   0x7   : > { %169 = sbr.rel (%p166_p2) target bundleno = 284 (0x11c), region = 32 }
   0xc   : > { %v439_v0 = vmov 0   ;;  %p203_p3 = scmp.lt.s32.totalorder %s202_s19, 2  ;;  %v440_v2 = vmov 1   ;;  %v441_v3 = vmov 2   ;;  %s505_s18 = smov (!%p198_p4, %s399_s18), 1  ;;  %vm237_vm0 = vcmask 64512  }
   0xd   : > { %427 = vset.pattern.permute.xlu0 %v439_v0  ;;  %429 = vset.pattern.permute.xlu1 %v441_v3  ;;  %s404_s23 = sshll.u32 %s505_s18, 3  ;;  %s407_s5 = sshll.u32 %s505_s18, 2 }
   0xe   : > { %s503_s19 = smov (!%p203_p3, %s202_s19), 2  ;;  %s201_s26 = scalar_lea.vmem %s498_s1, %s404_s23 }
   0xf   : > { %s405_s0 = sshll.u32 %s503_s19, 3  ;;  %v220_v5 = vld [vmem:[%s201_s26] sm:$0xff]  ;;  %s415_s27 = smul.u32 12, %s503_s19 }
  0x10   : > { %s206_s22 = scalar_lea.vmem %s499_s2, %s405_s0  ;;  %s218_s8 = scalar_lea.vmem %s501_s4, %s407_s5 }
  0x11   : > { %v219_v1 = vld [vmem:[%s206_s22] sm:$0xff]  ;;  %s213_s30 = scalar_lea.vmem %s500_s3, %s415_s27 }
  0x12   : > { %223 = vperm.xlu0 %427, %v219_v1   ;;  %234 = vperm.xlu1 %429, %v219_v1   ;;  %v232_v9 = vld [vmem:[%s213_s30] sm:$0xf]  ;;  %v409_v11 = vld [vmem:[%s213_s30 + $0x4] sm:$0xf]  ;;  %v411_v13 = vld [vmem:[%s213_s30 + $0x8] sm:$0xf] }
  0x1a   : > { %428 = vset.pattern.permute.xlu0 %v440_v2 }
  0x1b   : > { %228 = vperm.xlu0 %428, %v219_v1  }
  0x23   : > { %430 = vset.pattern.permute.xlu0 %v441_v3 }
  0x84   : > { %v224_v4 = vpop.permute.xlu0 %223  ;;  %v235_v14 = vpop.permute.xlu1 %234 }
  0x85   : > { %v226_v6 = vsub.f32 %v220_v5, %v224_v4 }
  0x8d   : > { %v229_v7 = vpop.permute.xlu0 %228 }
  0x8e   : > { %v231_v8 = vmul.f32 %v229_v7, %v226_v6 }
  0x90   : > { %256 = vmatpush.msra.mxu0 %v231_v8  ;;  %v261_v10 = vmul.f32 %v231_v8, %v231_v8 }
  0x91   : > { %408 = vmatmul.msk.f32.vlgmr.msra.gmra.mxu0 %vm237_vm0, %v232_v9 }
  0x92   : > { %282 = vmatpush.msra.mxu1 %v261_v10  ;;  %v288_v12 = vmul.f32 %v261_v10, %v231_v8 }
  0x93   : > { %410 = vmatmul.msk.f32.vlgmr.msra.gmra.mxu1 %vm237_vm0, %v409_v11 }
  0x94   : > { %309 = vmatpush.msra.mxu2 %v288_v12 }
  0x95   : > { %412 = vmatmul.msk.f32.vlgmr.msra.gmra.mxu2 %vm237_vm0, %v411_v13 }
 0x10e   : > { %v258_v15 = vpop.f32.mrf.mxu0 }
 0x10f   : > { %v259_v16 = vadd.f32 %v258_v15, %v235_v14 }
 0x110   : > { %v284_v17 = vpop.f32.mrf.mxu1 }
 0x111   : > { %v287_v18 = vadd.f32 %v284_v17, %v259_v16 }
 0x118   : > { %v311_v19 = vpop.f32.mrf.mxu2 }
 0x119   : > { %v314_v20 = vadd.f32 %v311_v19, %v287_v18 }
 0x11b   : > { %315 = vst [vmem:[%s218_s8] sm:$0xf] %v314_v20 }
 0x11c PF: > { %s15_s17 = sadd.s32 1, %s437_s17  }
 0x11d   : > { %p12_p5 = scmp.ge.s32.totalorder %s15_s17, 4  }
 0x11f   :  { %14 = sbr.rel (!%p12_p5) target bundleno = 2 (0x2), region = 70 }

</bundles_post_ra>
